<compile_context>
chip_gen: v7x
topology: tpu7x:2x2x1
jax: 0.10.0
libtpu: 0.0.40
codegen_flags: <defaults>
</compile_context>

<pallas_src>
from functools import partial

import jax
import jax.numpy as jnp
from jax.experimental import pallas as pl
from jax.experimental.pallas import tpu as pltpu


# --------------------------------------------------------------------------------------
# Kernel: per grid step, one batch-tile of natural-layout rows times the fused weight.
# --------------------------------------------------------------------------------------
def sff_kernel(x_ref, wt_ref, o_ref, *, precision):
    """x_ref: (TB, L, TC)   wt_ref: (Q, L)   o_ref: (TB, Q, TC).

    y[b, q, c] = sum_l W_total[l, q] * x[b, l, c]  ==  (W_total.T @ x[b])[q, c]
    """
    w = wt_ref[...]
    for b in range(x_ref.shape[0]):                       # TB is static -> unrolled
        y = jnp.dot(w, x_ref[b],
                    preferred_element_type=jnp.float32,
                    precision=precision)
        o_ref[b] = y.astype(o_ref.dtype)


# --------------------------------------------------------------------------------------
# Fused weight: conv1d('same', no bias) + residual + segment Linear -> one (L, Q) matrix
# --------------------------------------------------------------------------------------
def _fused_weight(conv_w, lin_w, *, seq_len, pred_len, period_len):
    """Returns W_total.T with shape (pred_len, seq_len), f32."""
    P = period_len
    pad = P // 2
    K = 1 + 2 * pad
    cw = conv_w.reshape(K).astype(jnp.float32)            # Conv1d weight (1,1,K) -> (K,)
    lw = lin_w.astype(jnp.float32)                        # Linear weight (SY, SX)

    # Banded conv+residual matrix M (L, L):  z_row = x_row @ M,  M[i, j] = cw[i-j+pad] + δ_ij
    i = jnp.arange(seq_len)[:, None]
    j = jnp.arange(seq_len)[None, :]
    k = i - j + pad
    band = jnp.where((k >= 0) & (k < K), cw[jnp.clip(k, 0, K - 1)], 0.0)
    m = band + jnp.eye(seq_len, dtype=jnp.float32)

    # Segment linear as a dense map:  Wk = kron(W.T, I_P)  (seq_len, pred_len)
    wk = jnp.kron(lw.T, jnp.eye(P, dtype=jnp.float32))

    w_total = jnp.matmul(m, wk, precision=jax.lax.Precision.HIGHEST)   # (L, Q), exact f32
    return w_total.T                                       # (Q, L) -> plain (Q,L)@(L,C) in-kernel


# --------------------------------------------------------------------------------------
# Wrapper
# --------------------------------------------------------------------------------------
def _choose_tiles(B, C, L, Q, act_itemsize, w_itemsize):
    """Channel tile (lane axis) + batch tile sized for a v7x-safe VMEM working set."""
    TC = C if C <= 512 else 512                            # full dim or 128-multiple
    budget = 24 << 20                                      # working-set target (<< 64 MiB on v7x)
    w_bytes = 2 * L * Q * w_itemsize                       # resident weight (count 2 bufs, safe)
    per_batch = 2 * (L + Q) * TC * act_itemsize            # dbl-buffered in+out tile bytes / row
    tb_cap = max(1, (budget - w_bytes) // max(per_batch, 1))
    # >= 2 grid steps whenever B >= 2 (both v7x TensorCores get work); cap the unrolled
    # in-kernel batch loop at 8.
    TB = int(max(1, min(8, pl.cdiv(B, 2), tb_cap)))
    vmem_used = w_bytes + TB * per_batch
    vmem_limit = int(min(max(vmem_used + (8 << 20), 16 << 20), 48 << 20))
    return TB, TC, vmem_limit


def sff_forward(x, conv_w, lin_w, *, seq_len, pred_len, enc_in, period_len):
    """x: (B, seq_len, enc_in) -> (B, pred_len, enc_in)"""
    B, L, C = x.shape
    assert (L, C) == (seq_len, enc_in)
    # The PyTorch module's reshapes require exact divisibility.
    assert seq_len % period_len == 0 and pred_len % period_len == 0, \
        "seq_len and pred_len must be multiples of period_len"
    Q = pred_len

    wt = _fused_weight(conv_w, lin_w, seq_len=seq_len, pred_len=pred_len,
                       period_len=period_len)
    if x.dtype == jnp.bfloat16:
        wt = wt.astype(jnp.bfloat16)                       # MXU-native bf16, f32 accumulation
        precision = None
    else:
        wt = wt.astype(jnp.float32)
        precision = jax.lax.Precision.HIGHEST              # full-f32 MXU path (memory-bound: free)

    TB, TC, vmem_limit = _choose_tiles(B, C, L, Q, x.dtype.itemsize, wt.dtype.itemsize)
    grid = (pl.cdiv(B, TB), pl.cdiv(C, TC))

    return pl.pallas_call(
        partial(sff_kernel, precision=precision),
        out_shape=jax.ShapeDtypeStruct((B, Q, C), x.dtype),
        grid=grid,
        in_specs=[
            pl.BlockSpec((TB, L, TC), lambda bi, ci: (bi, 0, ci)),   # natural-layout x tile
            pl.BlockSpec((Q, L), lambda bi, ci: (0, 0)),             # resident fused weight
        ],
        out_specs=pl.BlockSpec((TB, Q, TC), lambda bi, ci: (bi, 0, ci)),
        compiler_params=pltpu.CompilerParams(
            # TODO(synk): confirm in a trace that the batch axis is actually split across
            # v7x's two TensorCores; switch to pltpu.CORE_PARALLEL if one core idles.
            dimension_semantics=("parallel", "parallel"),
            vmem_limit_bytes=vmem_limit,
        ),
    )(x, wt)


# --------------------------------------------------------------------------------------
# Pure-JAX reference (mirrors the PyTorch forward op-by-op)
# --------------------------------------------------------------------------------------
def sff_ref(x, conv_w, lin_w, *, seq_len, pred_len, enc_in, period_len):
    B = x.shape[0]
    pad = period_len // 2
    K = 1 + 2 * pad
    SX = seq_len // period_len
    x2 = jnp.transpose(x, (0, 2, 1)).reshape(B * enc_in, seq_len)
    xpad = jnp.pad(x2, ((0, 0), (pad, pad)))
    cw = conv_w.reshape(K)
    conv = sum(cw[k] * xpad[:, k:k + seq_len] for k in range(K))
    z = conv + x2
    z3 = z.reshape(B * enc_in, SX, period_len)
    y3 = jnp.einsum("nxp,yx->nyp", z3, lin_w,
                    precision=jax.lax.Precision.HIGHEST)   # Linear(SX -> SY), no bias
    return jnp.transpose(y3.reshape(B, enc_in, pred_len), (0, 2, 1))


# --------------------------------------------------------------------------------------
if __name__ == "__main__":
    def run_case(batch, seq_len, pred_len, enc_in, period_len, dtype, tol):
        SX, SY = seq_len // period_len, pred_len // period_len
        K = 1 + 2 * (period_len // 2)
        key = jax.random.PRNGKey(0)
        kx, kc, kl = jax.random.split(key, 3)
        x = jax.random.normal(kx, (batch, seq_len, enc_in), dtype=jnp.float32)
        # Deterministic "synthetic checkpoint" parameters (module __init__ shapes).
        conv_w = jax.random.uniform(kc, (1, 1, K), dtype=jnp.float32,
                                    minval=-1.0 / K, maxval=1.0 / K)     # nn.Conv1d weight
        lin_w = jax.random.uniform(kl, (SY, SX), dtype=jnp.float32,
                                   minval=-1.0 / SX, maxval=1.0 / SX)    # nn.Linear weight

        out = sff_forward(x.astype(dtype), conv_w, lin_w,
                          seq_len=seq_len, pred_len=pred_len,
                          enc_in=enc_in, period_len=period_len)
        out = jax.block_until_ready(out)
        assert out.shape == (batch, pred_len, enc_in)
        assert out.dtype == dtype

        ref = sff_ref(x, conv_w, lin_w, seq_len=seq_len, pred_len=pred_len,
                      enc_in=enc_in, period_len=period_len)
        err = float(jnp.max(jnp.abs(out.astype(jnp.float32) - ref)))
        assert err <= tol, f"max abs err {err} (tol {tol})"

    # Case 1: tiny config, f32 (fused weight + precision=HIGHEST -> near-exact match).
    run_case(batch=2, seq_len=48, pred_len=48, enc_in=4, period_len=12,
             dtype=jnp.float32, tol=1e-4)
    # Case 2: module defaults (seq=pred=168, enc_in=12, period=24); odd batch exercises
    #         the masked partial batch tile.
    run_case(batch=3, seq_len=168, pred_len=168, enc_in=12, period_len=24,
             dtype=jnp.float32, tol=1e-4)
    # Case 3: bf16 activations + bf16 fused weight, f32 accumulation on the MXU.
    run_case(batch=2, seq_len=48, pred_len=48, enc_in=4, period_len=12,
             dtype=jnp.bfloat16, tol=6e-2)

    print("KERNEL_OK")
</pallas_src>

<mosaic_0001>
module attributes {stable_mosaic.version = 11 : i64} {
  func.func @sff_kernel(%arg0: i32, %arg1: i32, %arg2: memref<1x48x4xf32, #tpu.memory_space<vmem>>, %arg3: memref<48x48xf32, #tpu.memory_space<vmem>>, %arg4: memref<1x48x4xf32, #tpu.memory_space<vmem>>) attributes {dimension_semantics = [#tpu.dimension_semantics<parallel>, #tpu.dimension_semantics<parallel>], iteration_bounds = array<i64: 2, 1>, scalar_prefetch = 0 : i64, scratch_operands = 0 : i64, tpu.core_type = #tpu.core_type<tc>, window_params = [{transform_indices = @transform_0, window_bounds = array<i64: 1, 48, 4>}, {pipeline_mode = #tpu.pipeline_mode<synchronous>, transform_indices = @transform_1, window_bounds = array<i64: 48, 48>}, {transform_indices = @transform_2, window_bounds = array<i64: 1, 48, 4>}]} {
    %c0 = arith.constant 0 : index
    %c0_0 = arith.constant 0 : index
    %0 = vector.load %arg3[%c0, %c0_0] : memref<48x48xf32, #tpu.memory_space<vmem>>, vector<48x48xf32>
    %c0_1 = arith.constant 0 : index
    %c0_2 = arith.constant 0 : index
    %c0_3 = arith.constant 0 : index
    %1 = vector.load %arg2[%c0_1, %c0_2, %c0_3] : memref<1x48x4xf32, #tpu.memory_space<vmem>>, vector<1x48x4xf32>
    %2 = vector.shape_cast %1 : vector<1x48x4xf32> to vector<48x4xf32>
    %cst = arith.constant dense<0.000000e+00> : vector<48x4xf32>
    %3 = tpu.matmul %0, %2, %cst {dimension_numbers = #tpu.dot_dimension_numbers<[1], [0], [0], [1], [0, 0, 1, 1], [], []>, precision = #tpu.contract_precision<fp32>} : vector<48x48xf32>, vector<48x4xf32>, vector<48x4xf32> -> vector<48x4xf32>
    %c0_4 = arith.constant 0 : index
    %c0_5 = arith.constant 0 : index
    %c0_6 = arith.constant 0 : index
    %4 = vector.load %arg4[%c0_4, %c0_5, %c0_6] : memref<1x48x4xf32, #tpu.memory_space<vmem>>, vector<1x48x4xf32>
    %5 = vector.shape_cast %4 : vector<1x48x4xf32> to vector<48x4xf32>
    %6 = vector.shape_cast %3 : vector<48x4xf32> to vector<1x48x4xf32>
    tpu.vector_store %arg4[%c0_4, %c0_5, %c0_6], %6 {strides = array<i32>} : memref<1x48x4xf32, #tpu.memory_space<vmem>>, vector<1x48x4xf32>,
    return
  }
  func.func @transform_0(%arg0: i32, %arg1: i32) -> (i32, i32, i32) {
    %c0_i32 = arith.constant 0 : i32
    %c0_i32_0 = arith.constant 0 : i32
    return %arg0, %c0_i32, %arg1 : i32, i32, i32
  }
  func.func @transform_1(%arg0: i32, %arg1: i32) -> (i32, i32) {
    %c0_i32 = arith.constant 0 : i32
    %c0_i32_0 = arith.constant 0 : i32
    %c0_i32_1 = arith.constant 0 : i32
    return %c0_i32, %c0_i32_0 : i32, i32
  }
  func.func @transform_2(%arg0: i32, %arg1: i32) -> (i32, i32, i32) {
    %c0_i32 = arith.constant 0 : i32
    %c0_i32_0 = arith.constant 0 : i32
    return %arg0, %c0_i32, %arg1 : i32, i32, i32
  }
}

</mosaic_0001>

<bundles_post_ra>
// kernel: tpu_custom_call.1
= control target key start
LH: loop header
LB: loop body
LE: loop exit
PB: predicated region body
PF: predicated region fallthrough
CT: control target
= control target key end

     0   :  { %s1395_s9 = smov 0   ;;  %s1397_s10 = smov 0   ;;  %s1585_s0 = inlined_call_operand.vmem [shape: f32[2,48,4], index: 0, kind: input, shape index: {}]   ;;  %s1586_s1 = inlined_call_operand.vmem [shape: f32[48,48], index: 1, kind: input, shape index: {}]   ;;  %s1587_s2 = inlined_call_operand.vmem [shape: f32[2,48,4], index: 2, kind: output, shape index: {}]  }
   0x1   :  { %s1399_s11 = smov 0  }
   0x2 LB: > { %s24_s12 = sadd.s32 1, %s1374_s10  ;;  %p1026_p0 = scmp.ge.s32.totalorder %s1378_s11, 1  ;;  %s1378_s11 = sphi %s1399_s11, %s12_s11   ;;  %s1374_s10 = sphi %s1397_s10, %s1589_s10   ;;  %s1370_s9 = sphi %s1395_s9, %s1588_s9  }
   0x3   : > { %p26_p1 = scmp.ge.s32.totalorder %s24_s12, 2  ;;  %p131_p2 = scmp.lt.s32.totalorder %s1378_s11, 3 }
   0x5   : > { %s1591_s12 = smov (%p26_p1, %s24_s12), 0  ;;  %p132_p3 = pnand %p1026_p0, %p131_p2 }
   0x6   : > { %p159_p4 = scmp.lt.s32.totalorder (!%p132_p3), %s1370_s9, 1  ;;  %v175_v0 = vld [vmem:[%s1586_s1] sm:$0xff] (!%p132_p3)  ;;  %vm187_vm0 = vcmask (!%p132_p3), 392192   ;;  %v176_v1 = vld [vmem:[%s1586_s1 + $0x8] sm:$0xff] (!%p132_p3)  ;;  %v177_v2 = vld [vmem:[%s1586_s1 + $0x10] sm:$0xff] (!%p132_p3)  ;;  %vm932_vm1 = vcmask (!%p132_p3), 31744  }
   0x7   : > { %135 = sbr.rel (%p132_p3) target bundleno = 283 (0x11b), region = 28  ;;  %v189_v3 = vsel (!%p132_p3), %vm187_vm0, %v175_v0, 0  ;;  %v192_v4 = vsel (!%p132_p3), %vm187_vm0, %v176_v1, 0  ;;  %v195_v5 = vsel (!%p132_p3), %vm187_vm0, %v177_v2, 0  ;;  %v178_v6 = vld [vmem:[%s1586_s1 + $0x18] sm:$0xff] (!%p132_p3)  ;;  %v179_v11 = vld [vmem:[%s1586_s1 + $0x20] sm:$0xff] (!%p132_p3) }
   0x8   : > { %v1430_v7 = vand.u32 (!%p132_p3), 4294901760, %v189_v3  ;;  %v198_v8 = vsel (!%p132_p3), %vm187_vm0, %v178_v6, 0  ;;  %v1433_v9 = vand.u32 (!%p132_p3), 4294901760, %v192_v4  ;;  %v1435_v10 = vand.u32 (!%p132_p3), 4294901760, %v195_v5  ;;  %v180_v13 = vld [vmem:[%s1586_s1 + $0x28] sm:$0xff] (!%p132_p3) }
   0x9   : > { %v1447_v14 = vand.u32 (!%p132_p3), 4294901760, %v198_v8  ;;  %v201_v16 = vsel (!%p132_p3), %vm187_vm0, %v179_v11, 0  ;;  %v204_v22 = vsel (!%p132_p3), %vm187_vm0, %v180_v13, 0 }
   0xa   : > { %v1442_v12 = vsub.f32 (!%p132_p3), %v189_v3, %v1430_v7  ;;  %v1457_v20 = vsub.f32 (!%p132_p3), %v192_v4, %v1433_v9  ;;  %v1460_v21 = vsub.f32 (!%p132_p3), %v195_v5, %v1435_v10  ;;  %v1467_v33 = vand.u32 (!%p132_p3), 4294901760, %v201_v16 }
   0xb   : > { %v1465_v32 = vsub.f32 (!%p132_p3), %v198_v8, %v1447_v14  ;;  %v1478_v41 = vand.u32 (!%p132_p3), 4294901760, %v204_v22 }
   0xc   : > { %v279_v15 = vand.u32 (!%p132_p3), 4294901760, %v1442_v12  ;;  %v289_v40 = vand.u32 (!%p132_p3), 4294901760, %v1457_v20  ;;  %v299_v45 = vand.u32 (!%p132_p3), 4294901760, %v1460_v21  ;;  %v1492_v47 = vsub.f32 (!%p132_p3), %v201_v16, %v1467_v33 }
   0xd   : > { %v309_v51 = vand.u32 (!%p132_p3), 4294901760, %v1465_v32  ;;  %v1505_v55 = vsub.f32 (!%p132_p3), %v204_v22, %v1478_v41 }
   0xe   : > { %s1593_s9 = smov (!%p159_p4, %s1370_s9), 1  ;;  %v280_v29 = vsub.f32 %v1442_v12, %v279_v15  ;;  %1178 = vmatprep.mubr.f32.mxu0 %v279_v15  ;;  %v290_v52 = vsub.f32 %v1457_v20, %v289_v40  ;;  %v300_v60 = vsub.f32 %v1460_v21, %v299_v45  ;;  %v319_v63 = vand.u32 4294901760, %v1492_v47 }
   0xf   : > { %s1331_s23 = smul.u32 48, %s1593_s9  ;;  %v310_v8 = vsub.f32 %v1465_v32, %v309_v51  ;;  %v329_v11 = vand.u32 4294901760, %v1505_v55 }
  0x10   : > { %v281_v39 = vand.u32 4294901760, %v280_v29  ;;  %v291_v4 = vand.u32 4294901760, %v290_v52  ;;  %v301_v16 = vand.u32 4294901760, %v300_v60 }
  0x11   : > { %s166_s28 = scalar_lea.vmem %s1585_s0, %s1331_s23  ;;  %s174_s3 = scalar_lea.vmem %s1587_s2, %s1331_s23 }
  0x12   : > { %v181_v17 = vld [vmem:[%s166_s28] sm:$0xff]  ;;  %v182_v18 = vld [vmem:[%s166_s28 + $0x8] sm:$0xff]  ;;  %v183_v19 = vld [vmem:[%s166_s28 + $0x10] sm:$0xff]  ;;  %1115 = vmatprep.mubr.f32.mxu1 %v281_v39 }
  0x13   : > { %v207_v23 = vand.u32 4294901760, %v181_v17  ;;  %v210_v24 = vand.u32 4294901760, %v182_v18  ;;  %v184_v25 = vld [vmem:[%s166_s28 + $0x18] sm:$0xff]  ;;  %v213_v26 = vand.u32 4294901760, %v183_v19  ;;  %v185_v27 = vld [vmem:[%s166_s28 + $0x20] sm:$0xff]  ;;  %v186_v28 = vld [vmem:[%s166_s28 + $0x28] sm:$0xff] }
  0x14   : > { %v216_v30 = vand.u32 4294901760, %v184_v25  ;;  %v219_v31 = vand.u32 4294901760, %v185_v27  ;;  %v222_v35 = vand.u32 4294901760, %v186_v28 }
  0x15   : > { %v1469_v34 = vpack.c.bf16 %v210_v24, %v207_v23  ;;  %v1471_v36 = vsub.f32 %v181_v17, %v207_v23  ;;  %v1473_v37 = vsub.f32 %v182_v18, %v210_v24  ;;  %v1484_v44 = vsub.f32 %v183_v19, %v213_v26 }
  0x16   : > { %v1475_v38 = vpack.c.bf16 %v216_v30, %v213_v26  ;;  %v1489_v46 = vsub.f32 %v184_v25, %v216_v30  ;;  %v1496_v48 = vpack.c.bf16 %v222_v35, %v219_v31  ;;  %v1507_v58 = vsub.f32 %v185_v27, %v219_v31 }
  0x17   : > { %1230 = vmatprep.subr.bf16.mxu1 %v1469_v34  ;;  %1266 = vmatprep.subr.bf16.mxu0 %v1469_v34  ;;  %v340_v42 = vand.u32 4294901760, %v1471_v36  ;;  %v347_v43 = vand.u32 4294901760, %v1473_v37  ;;  %v354_v53 = vand.u32 4294901760, %v1484_v44  ;;  %v1509_v59 = vsub.f32 %v186_v28, %v222_v35 }
  0x18   : > { %1232 = vmatpush3.bf16.msra.mxu1 %v1469_v34  ;;  %1268 = vmatpush3.bf16.msra.mxu0 %v1469_v34  ;;  %v361_v54 = vand.u32 4294901760, %v1489_v46  ;;  %v368_v2 = vand.u32 4294901760, %v1507_v58  ;;  %v320_v17 = vsub.f32 %v1492_v47, %v319_v63  ;;  %v311_v24 = vand.u32 4294901760, %v310_v8 }
  0x19   : > { %1234 = vmatprep.subr.bf16.mxu1 %v1475_v38  ;;  %1270 = vmatprep.subr.bf16.mxu0 %v1475_v38  ;;  %v341_v49 = vsub.f32 %v1471_v36, %v340_v42  ;;  %v348_v50 = vsub.f32 %v1473_v37, %v347_v43  ;;  %v355_v61 = vsub.f32 %v1484_v44, %v354_v53  ;;  %v375_v3 = vand.u32 4294901760, %v1509_v59 }
  0x1a   : > { %v362_v62 = vsub.f32 %v1489_v46, %v361_v54  ;;  %v1277_v1 = vpack.c.bf16 %v347_v43, %v340_v42  ;;  %v369_v13 = vsub.f32 %v1507_v58, %v368_v2  ;;  %v1281_v19 = vpack.c.bf16 %v361_v54, %v354_v53 }
  0x1b   : > { %v342_v56 = vand.u32 4294901760, %v341_v49  ;;  %v349_v57 = vand.u32 4294901760, %v348_v50  ;;  %v356_v5 = vand.u32 4294901760, %v355_v61  ;;  %v376_v15 = vsub.f32 %v1509_v59, %v375_v3 }
  0x1c   : > { %1236 = vmatpush3.bf16.msra.mxu1 %v1475_v38  ;;  %1272 = vmatpush3.bf16.msra.mxu0 %v1475_v38  ;;  %v363_v6 = vand.u32 4294901760, %v362_v62  ;;  %v370_v22 = vand.u32 4294901760, %v369_v13  ;;  %v330_v25 = vsub.f32 %v1505_v55, %v329_v11  ;;  %v321_v26 = vand.u32 4294901760, %v320_v17 }
  0x1d   : > { %1238 = vmatprep.subr.bf16.mxu1 %v1496_v48  ;;  %1274 = vmatprep.subr.bf16.mxu0 %v1496_v48  ;;  %v1241_v0 = vpack.c.bf16 %v349_v57, %v342_v56  ;;  %v377_v23 = vand.u32 4294901760, %v376_v15  ;;  %v1285_v28 = vpack.c.bf16 %v375_v3, %v368_v2  ;;  %v1253_v30 = vpack.c.bf16 %v1473_v37, %v1471_v36 }
  0x1e   : > { %v1245_v18 = vpack.c.bf16 %v363_v6, %v356_v5  ;;  %v331_v29 = vand.u32 4294901760, %v330_v25  ;;  %v1257_v31 = vpack.c.bf16 %v1489_v46, %v1484_v44  ;;  %v1261_v35 = vpack.c.bf16 %v1509_v59, %v1507_v58 }
  0x1f   : > { %v1249_v27 = vpack.c.bf16 %v377_v23, %v370_v22 }
  0x20   : > { %1240 = vmatpush3.bf16.msra.mxu1 %v1496_v48  ;;  %1276 = vmatpush3.bf16.msra.mxu0 %v1496_v48 }
  0x21   : > { %1242 = vmatprep.subr.bf16.mxu1 %v1241_v0  ;;  %1278 = vmatprep.subr.bf16.mxu0 %v1277_v1 }
  0x23   : > { %1116 = vmatmul.mubr.f32.vlgmr.msra.gmra.mrb[0].mxu1 %v291_v4  ;;  %1179 = vmatmul.mubr.f32.vlgmr.msra.gmra.mrb[0].mxu0 %v289_v40 }
  0x24   : > { %1244 = vmatpush3.bf16.msra.mxu1 %v1241_v0  ;;  %1280 = vmatpush3.bf16.msra.mxu0 %v1277_v1 }
  0x25   : > { %1118 = vmatprep.mubr.f32.mxu1 %v301_v16  ;;  %1181 = vmatprep.mubr.f32.mxu0 %v299_v45 }
  0x26   : > { %1246 = vmatprep.subr.bf16.mxu1 %v1245_v18  ;;  %1282 = vmatprep.subr.bf16.mxu0 %v1281_v19 }
  0x27   : > { %1119 = vmatmul.mubr.f32.gmra.mrb[2].mxu1 %v311_v24  ;;  %1182 = vmatmul.mubr.f32.gmra.mrb[2].mxu0 %v309_v51 }
  0x28   : > { %1248 = vmatpush3.bf16.msra.mxu1 %v1245_v18  ;;  %1284 = vmatpush3.bf16.msra.mxu0 %v1281_v19 }
  0x29   : > { %1121 = vmatprep.mubr.f32.mxu1 %v321_v26  ;;  %1184 = vmatprep.mubr.f32.mxu0 %v319_v63 }
  0x2a   : > { %1250 = vmatprep.subr.bf16.mxu1 %v1249_v27  ;;  %1286 = vmatprep.subr.bf16.mxu0 %v1285_v28 }
  0x2b   : > { %1122 = vmatmul.mubr.f32.gmra.mrb[4].mxu1 %v331_v29  ;;  %1185 = vmatmul.mubr.f32.gmra.mrb[4].mxu0 %v329_v11 }
  0x2c   : > { %1252 = vmatpush3.bf16.msra.mxu1 %v1249_v27  ;;  %1288 = vmatpush3.bf16.msra.mxu0 %v1285_v28 }
  0x2d   : > { %1136 = vmatprep.mubr.f32.mxu1 %v1430_v7  ;;  %1199 = vmatprep.mubr.f32.mxu0 %v1430_v7 }
  0x2e   : > { %1254 = vmatprep.subr.bf16.mxu1 %v1253_v30  ;;  %1290 = vmatprep.subr.bf16.mxu0 %v1469_v34 }
  0x2f   : > { %1137 = vmatmul.mubr.f32.vlgmr.msra.gmra.mrb[0].mxu1 %v1433_v9  ;;  %1200 = vmatmul.mubr.f32.vlgmr.msra.gmra.mrb[0].mxu0 %v1433_v9 }
  0x30   : > { %1256 = vmatpush3.bf16.msra.mxu1 %v1253_v30  ;;  %1292 = vmatpush3.bf16.msra.mxu0 %v1469_v34 }
  0x31   : > { %1139 = vmatprep.mubr.f32.mxu1 %v1435_v10  ;;  %1202 = vmatprep.mubr.f32.mxu0 %v1435_v10 }
  0x32   : > { %1258 = vmatprep.subr.bf16.mxu1 %v1257_v31  ;;  %1294 = vmatprep.subr.bf16.mxu0 %v1475_v38 }
  0x33   : > { %1140 = vmatmul.mubr.f32.gmra.mrb[2].mxu1 %v1447_v14  ;;  %1203 = vmatmul.mubr.f32.gmra.mrb[2].mxu0 %v1447_v14 }
  0x34   : > { %1260 = vmatpush3.bf16.msra.mxu1 %v1257_v31  ;;  %1296 = vmatpush3.bf16.msra.mxu0 %v1475_v38 }
  0x35   : > { %1142 = vmatprep.mubr.f32.mxu1 %v1467_v33  ;;  %1205 = vmatprep.mubr.f32.mxu0 %v1467_v33 }
  0x36   : > { %1262 = vmatprep.subr.bf16.mxu1 %v1261_v35  ;;  %1298 = vmatprep.subr.bf16.mxu0 %v1496_v48 }
  0x37   : > { %1143 = vmatmul.mubr.f32.gmra.mrb[4].mxu1 %v1478_v41  ;;  %1206 = vmatmul.mubr.f32.gmra.mrb[4].mxu0 %v1478_v41 }
  0x38   : > { %1264 = vmatpush3.bf16.msra.mxu1 %v1261_v35  ;;  %1300 = vmatpush3.bf16.msra.mxu0 %v1496_v48 }
  0x39   : > { %1157 = vmatprep.mubr.f32.mxu1 %v1442_v12  ;;  %1220 = vmatprep.mubr.f32.mxu0 %v1430_v7 }
  0x3b   : > { %1158 = vmatmul.mubr.f32.vlgmr.msra.gmra.mrb[0].mxu1 %v1457_v20  ;;  %1221 = vmatmul.mubr.f32.vlgmr.msra.gmra.mrb[0].mxu0 %v1433_v9 }
  0x3c   : > { %1160 = vmatprep.mubr.f32.mxu1 %v1460_v21  ;;  %1223 = vmatprep.mubr.f32.mxu0 %v1435_v10 }
  0x3f   : > { %1161 = vmatmul.mubr.f32.gmra.mrb[2].mxu1 %v1465_v32  ;;  %1224 = vmatmul.mubr.f32.gmra.mrb[2].mxu0 %v1447_v14 }
  0x40   : > { %1163 = vmatprep.mubr.f32.mxu1 %v1492_v47  ;;  %1226 = vmatprep.mubr.f32.mxu0 %v1467_v33 }
  0x43   : > { %1164 = vmatmul.mubr.f32.gmra.mrb[4].mxu1 %v1505_v55  ;;  %1227 = vmatmul.mubr.f32.gmra.mrb[4].mxu0 %v1478_v41 }
 0x10e   : > { %v1159_v7 = vpop.f32.mrb[0].mxu1  ;;  %v1222_v9 = vpop.f32.mrb[0].mxu0 }
 0x10f   : > { %v1301_v10 = vadd.f32 %v1222_v9, %v1159_v7  ;;  %v548_v12 = vpop.f32.mrb[1].mxu1  ;;  %v898_v20 = vpop.f32.mrb[1].mxu0 }
 0x110   : > { %v1302_v14 = vadd.f32 %v898_v20, %v548_v12 }
 0x111   : > { %934 = vst.msk [vmem:[%s174_s3 + $0x8] sm:$0xff] %vm932_vm1, %v1301_v10 }
 0x112   : > { %933 = vst.msk [vmem:[%s174_s3] sm:$0xff] %vm932_vm1, %v1302_v14  ;;  %v1162_v21 = vpop.f32.mrb[2].mxu1  ;;  %v1225_v32 = vpop.f32.mrb[2].mxu0 }
 0x113   : > { %v1303_v33 = vadd.f32 %v1225_v32, %v1162_v21  ;;  %v562_v34 = vpop.f32.mrb[3].mxu1  ;;  %v910_v36 = vpop.f32.mrb[3].mxu0 }
 0x114   : > { %v1304_v37 = vadd.f32 %v910_v36, %v562_v34 }
 0x115   : > { %936 = vst.msk [vmem:[%s174_s3 + $0x18] sm:$0xff] %vm932_vm1, %v1303_v33 }
 0x116   : > { %935 = vst.msk [vmem:[%s174_s3 + $0x10] sm:$0xff] %vm932_vm1, %v1304_v37  ;;  %v1165_v38 = vpop.f32.mrb[4].mxu1  ;;  %v1228_v39 = vpop.f32.mrb[4].mxu0 }
 0x117   : > { %v1305_v40 = vadd.f32 %v1228_v39, %v1165_v38  ;;  %v576_v41 = vpop.f32.mrb[5].mxu1  ;;  %v922_v42 = vpop.f32.mrb[5].mxu0 }
 0x118   : > { %v1306_v43 = vadd.f32 %v922_v42, %v576_v41 }
 0x119   : > { %938 = vst.msk [vmem:[%s174_s3 + $0x28] sm:$0xff] %vm932_vm1, %v1305_v40 }
 0x11a   : > { %937 = vst.msk [vmem:[%s174_s3 + $0x20] sm:$0xff] %vm932_vm1, %v1306_v43 }
 0x11b PF: > { %s12_s11 = sadd.s32 1, %s1378_s11   ;;  %s1588_s9 = smov %s1374_s10 }
 0x11c   : > { %p9_p5 = scmp.ge.s32.totalorder %s12_s11, 4   ;;  %s1589_s10 = smov %s1591_s12 }
 0x11e   :  { %11 = sbr.rel (!%p9_p5) target bundleno = 2 (0x2), region = 58 }

</bundles_post_ra>
